<compile_context>
chip_gen: v7x
topology: tpu7x:2x2x1
jax: 0.10.0
libtpu: 0.0.40
codegen_flags: <defaults>
</compile_context>

<pallas_src>
import functools

import jax
import jax.numpy as jnp
from jax.experimental import pallas as pl
from jax.experimental.pallas import tpu as pltpu

ALPHA = 0.5  # leaky slope of the invertible activation flow

_TARGET_ROWS = 1024  # rows of 128 lanes per block (~512 KiB of f32)


def _choose_tiles(n_batch, n_rows, itemsize):
    """Pick (TB, TR): TB | N, TR | R (or TR == R), block ~ _TARGET_ROWS rows."""
    sub_mult = 16 if itemsize == 2 else 8
    if n_rows <= _TARGET_ROWS:
        tr = n_rows
        # Pack batch elements per block, but keep >= 2 batch tiles when N >= 2
        # so the "parallel" axis feeds both v7x TensorCores.
        max_tb = n_batch // 2 if n_batch >= 2 else 1
        max_tb = max(max_tb, 1)
        tb = 1
        for d in range(1, n_batch + 1):
            if n_batch % d == 0 and d <= max_tb and d * tr <= _TARGET_ROWS:
                tb = d
        return tb, tr
    # Large per-batch feature count: tile the row axis instead.
    tb = 1
    tr = n_rows  # fallback: full extent is always layout-legal
    for d in range(_TARGET_ROWS, sub_mult - 1, -1):
        if d % sub_mult == 0 and n_rows % d == 0:
            tr = d
            break
    return tb, tr


def _compose_kernel(x_ref, p_ref, x_out_ref, nneg_ref, *, slope):
    """One grid step = TB batch elements x TR rows of 128 features.

    x_ref     : (TB, TR, 128) VMEM   lane/sublane-dense input block
    p_ref     : (TR, 4)       VMEM   per-row params [a0, c0, a1, c1]
    x_out_ref : (TB, TR, 128) VMEM
    nneg_ref  : (TB, 1, 1)    VMEM   int32 per-batch negative count
                                     (accumulator, resident across the r axis)
    """
    r = pl.program_id(1)

    @pl.when(r == 0)
    def _():
        nneg_ref[...] = jnp.zeros_like(nneg_ref)

    x = x_ref[...].astype(jnp.float32)
    p = p_ref[...].astype(jnp.float32)
    a0 = p[:, 0:1][None, :, :]          # (1, TR, 1) -> lane-broadcast in the FMA
    c0 = p[:, 1:2][None, :, :]
    a1 = p[:, 2:3][None, :, :]
    c1 = p[:, 3:4][None, :, :]

    # flow 1 (affine; fwd/inv parameters pre-folded in the wrapper)
    x = x * a0 + c0

    # flow 2 (invertible leaky activation) fused with flow 3's scale
    neg = x < 0.0
    x = x * jnp.where(neg, a1 * jnp.float32(slope), a1) + c1

    x_out_ref[...] = x.astype(x_out_ref.dtype)

    # data-dependent log-det term: per-batch negative-element count.
    # Per-tile count <= TR*128 < 2^24, so the f32 partial sum is exact; the
    # cross-tile accumulation is int32 (exact for arbitrarily large C*H*W).
    cnt = jnp.sum(neg.astype(jnp.float32), axis=-1, keepdims=True)  # (TB, TR, 1)
    cnt = jnp.sum(cnt, axis=-2, keepdims=True)                      # (TB, 1, 1)
    nneg_ref[...] += cnt.astype(jnp.int32)


def compose_forward(x_nchw, s1, b1, s2, b2, *, inverse=False):
    """Pallas-fused Compose.forward.  Returns (x_out NCHW, total_logd (N,))."""
    N, C, H, W = x_nchw.shape
    HW = H * W
    F = C * HW
    # Each 128-lane row of the flattened (C,H,W) tensor must belong to a single
    # channel so the affine params can be passed per-row (16*R bytes) instead of
    # per-feature (16*F bytes of redundant HBM traffic).
    assert HW % 128 == 0, "H*W must be a multiple of 128"
    # TODO(synk): support C*H*W % 128 == 0 with H*W % 128 != 0 (needs per-lane params).
    R = F // 128
    RC = HW // 128

    x_flat = x_nchw.reshape(N, R, 128)
    itemsize = jnp.dtype(x_flat.dtype).itemsize

    log_alpha = jnp.log(jnp.float32(ALPHA))
    if not inverse:
        # z = exp(s1)*x + b1 ; leaky(alpha) ; z = exp(s2)*x + b2
        aa0, cc0 = jnp.exp(s1), b1
        aa1, cc1 = jnp.exp(s2), b2
        const_logd = (jnp.sum(s1) + jnp.sum(s2)) * jnp.float32(HW)
        coeff = log_alpha
        slope = ALPHA
    else:
        # x = (y - b2)*exp(-s2) ; leaky(1/alpha) ; x = (. - b1)*exp(-s1)
        aa0, cc0 = jnp.exp(-s2), -b2 * jnp.exp(-s2)
        aa1, cc1 = jnp.exp(-s1), -b1 * jnp.exp(-s1)
        const_logd = -(jnp.sum(s1) + jnp.sum(s2)) * jnp.float32(HW)
        coeff = -log_alpha
        slope = 1.0 / ALPHA

    # Per-ROW parameters (each row = one channel): (R, 4) float32 -- tiny.
    def rows(p):
        return jnp.repeat(p.astype(jnp.float32), RC)

    params = jnp.stack([rows(aa0), rows(cc0), rows(aa1), rows(cc1)], axis=1)

    TB, TR = _choose_tiles(N, R, itemsize)
    grid = (N // TB, R // TR)

    # Explicit VMEM budget: double-buffered x-in, x-out, params, count block.
    x_blk = TB * TR * 128 * itemsize
    p_blk = (-(-TR // 8)) * 8 * 128 * 4     # (TR, 4) lane-padded to 128
    n_blk = 8 * 128 * 4
    need = 2 * (2 * x_blk + p_blk + n_blk)
    vmem_limit = int(min(max(2 * need + (2 << 20), 8 << 20), 96 << 20))

    cost = pl.CostEstimate(
        flops=int(5 * N * F),
        transcendentals=0,
        bytes_accessed=int(2 * N * F * itemsize + grid[0] * R * 16 + N * 4),
    )

    kernel = functools.partial(_compose_kernel, slope=float(slope))

    x_out, nneg = pl.pallas_call(
        kernel,
        out_shape=(
            jax.ShapeDtypeStruct((N, R, 128), x_flat.dtype),
            jax.ShapeDtypeStruct((N, 1, 1), jnp.int32),
        ),
        grid_spec=pltpu.PrefetchScalarGridSpec(
            num_scalar_prefetch=0,
            grid=grid,
            in_specs=[
                pl.BlockSpec((TB, TR, 128), lambda i, r: (i, r, 0)),
                pl.BlockSpec((TR, 4), lambda i, r: (r, 0)),
            ],
            out_specs=[
                pl.BlockSpec((TB, TR, 128), lambda i, r: (i, r, 0)),
                pl.BlockSpec((TB, 1, 1), lambda i, r: (i, 0, 0)),
            ],
        ),
        compiler_params=pltpu.CompilerParams(
            dimension_semantics=("parallel", "arbitrary"),
            vmem_limit_bytes=vmem_limit,
        ),
        cost_estimate=cost,
    )(x_flat, params)

    # Constant (x-independent) logd term added back outside the kernel.
    total_logd = const_logd + coeff * nneg[:, 0, 0].astype(jnp.float32)
    return x_out.reshape(N, C, H, W), total_logd


def compose_reference(x_nchw, s1, b1, s2, b2, *, inverse=False):
    """Plain-JAX reference mirroring Compose.forward with the same 3 flows."""
    N, C, H, W = x_nchw.shape
    HW = H * W
    x = x_nchw.reshape(N, C, HW).astype(jnp.float32)
    log_alpha = jnp.log(jnp.float32(ALPHA))
    logd = jnp.zeros((N,), jnp.float32)
    s1b = s1[None, :, None]
    b1b = b1[None, :, None]
    s2b = s2[None, :, None]
    b2b = b2[None, :, None]
    if not inverse:
        x = jnp.exp(s1b) * x + b1b
        logd = logd + jnp.sum(s1) * HW
        neg = (x < 0.0)
        logd = logd + log_alpha * jnp.sum(neg, axis=(1, 2)).astype(jnp.float32)
        x = jnp.where(neg, ALPHA * x, x)
        x = jnp.exp(s2b) * x + b2b
        logd = logd + jnp.sum(s2) * HW
    else:
        x = (x - b2b) * jnp.exp(-s2b)
        logd = logd - jnp.sum(s2) * HW
        neg = (x < 0.0)
        logd = logd - log_alpha * jnp.sum(neg, axis=(1, 2)).astype(jnp.float32)
        x = jnp.where(neg, x / ALPHA, x)
        x = (x - b1b) * jnp.exp(-s1b)
        logd = logd - jnp.sum(s1) * HW
    return x.reshape(N, C, H, W), logd


if __name__ == "__main__":
    key = jax.random.PRNGKey(0)
    kx, k1, k2, k3, k4 = jax.random.split(key, 5)

    N, C, H, W = 2, 4, 16, 16
    x = jax.random.normal(kx, (N, C, H, W), dtype=jnp.float32)

    # deterministic per-channel flow parameters (synthetic, not a checkpoint)
    s1 = 0.1 * jax.random.normal(k1, (C,), dtype=jnp.float32)
    b1 = 0.1 * jax.random.normal(k2, (C,), dtype=jnp.float32)
    s2 = 0.1 * jax.random.normal(k3, (C,), dtype=jnp.float32)
    b2 = 0.1 * jax.random.normal(k4, (C,), dtype=jnp.float32)

    y, logd = compose_forward(x, s1, b1, s2, b2, inverse=False)
    jax.block_until_ready((y, logd))

    y_ref, logd_ref = compose_reference(x, s1, b1, s2, b2, inverse=False)
    assert y.shape == (N, C, H, W)
    assert logd.shape == (N,)
    assert jnp.allclose(y, y_ref, atol=1e-5, rtol=1e-5)
    assert jnp.allclose(logd, logd_ref, atol=1e-4, rtol=1e-5)

    # round-trip check through the inverse direction (Compose semantics)
    x_back, logd_inv = compose_forward(y, s1, b1, s2, b2, inverse=True)
    jax.block_until_ready((x_back, logd_inv))
    assert jnp.allclose(x_back, x, atol=1e-4, rtol=1e-4)
    assert jnp.allclose(logd + logd_inv, jnp.zeros((N,)), atol=1e-3)

    # bf16 I/O path (compute stays f32 in-kernel); loose check on the output.
    yb, logdb = compose_forward(x.astype(jnp.bfloat16), s1, b1, s2, b2,
                                inverse=False)
    jax.block_until_ready((yb, logdb))
    assert yb.dtype == jnp.bfloat16
    assert jnp.allclose(yb.astype(jnp.float32), y_ref, atol=5e-2, rtol=5e-2)

    print("KERNEL_OK")
</pallas_src>

<mosaic_0001>
module attributes {stable_mosaic.version = 11 : i64} {
  func.func @_compose_kernel(%arg0: i32, %arg1: i32, %arg2: memref<1x8x128xf32, #tpu.memory_space<vmem>>, %arg3: memref<8x4xf32, #tpu.memory_space<vmem>>, %arg4: memref<1x8x128xf32, #tpu.memory_space<vmem>>, %arg5: memref<1x1x1xi32, #tpu.memory_space<vmem>>) attributes {dimension_semantics = [#tpu.dimension_semantics<parallel>, #tpu.dimension_semantics<arbitrary>], iteration_bounds = array<i64: 2, 1>, scalar_prefetch = 0 : i64, scratch_operands = 0 : i64, tpu.core_type = #tpu.core_type<tc>, window_params = [{transform_indices = @transform_0, window_bounds = array<i64: 1, 8, 128>}, {transform_indices = @transform_1, window_bounds = array<i64: 8, 4>}, {transform_indices = @transform_2, window_bounds = array<i64: 1, 8, 128>}, {transform_indices = @transform_3, window_bounds = array<i64: 1, 1, 1>}]} {
    %c0_i32 = arith.constant 0 : i32
    %0 = arith.cmpi eq, %arg1, %c0_i32 : i32
    %1 = arith.extui %0 : i1 to i32
    %c0_i32_0 = arith.constant 0 : i32
    %2 = arith.cmpi ne, %1, %c0_i32_0 : i32
    scf.if %2 {
      %c0_i32_17 = arith.constant 0 : i32
      %40 = vector.broadcast %c0_i32_17 : i32 to vector<1x1x1xi32>
      %c0_18 = arith.constant 0 : index
      %c0_19 = arith.constant 0 : index
      %c0_20 = arith.constant 0 : index
      %41 = vector.load %arg5[%c0_18, %c0_19, %c0_20] : memref<1x1x1xi32, #tpu.memory_space<vmem>>, vector<1x1x1xi32>
      tpu.vector_store %arg5[%c0_18, %c0_19, %c0_20], %40 {strides = array<i32>} : memref<1x1x1xi32, #tpu.memory_space<vmem>>, vector<1x1x1xi32>,
    } else {
    }
    %c0 = arith.constant 0 : index
    %c0_1 = arith.constant 0 : index
    %c0_2 = arith.constant 0 : index
    %3 = vector.load %arg2[%c0, %c0_1, %c0_2] : memref<1x8x128xf32, #tpu.memory_space<vmem>>, vector<1x8x128xf32>
    %c0_3 = arith.constant 0 : index
    %c0_4 = arith.constant 0 : index
    %4 = vector.load %arg3[%c0_3, %c0_4] : memref<8x4xf32, #tpu.memory_space<vmem>>, vector<8x4xf32>
    %5 = vector.extract_strided_slice %4 {offsets = [0, 0], sizes = [8, 1], strides = [1, 1]} : vector<8x4xf32> to vector<8x1xf32>
    %6 = vector.shape_cast %5 : vector<8x1xf32> to vector<1x8x1xf32>
    %7 = vector.extract_strided_slice %4 {offsets = [0, 1], sizes = [8, 1], strides = [1, 1]} : vector<8x4xf32> to vector<8x1xf32>
    %8 = vector.shape_cast %7 : vector<8x1xf32> to vector<1x8x1xf32>
    %9 = vector.extract_strided_slice %4 {offsets = [0, 2], sizes = [8, 1], strides = [1, 1]} : vector<8x4xf32> to vector<8x1xf32>
    %10 = vector.shape_cast %9 : vector<8x1xf32> to vector<1x8x1xf32>
    %11 = vector.extract_strided_slice %4 {offsets = [0, 3], sizes = [8, 1], strides = [1, 1]} : vector<8x4xf32> to vector<8x1xf32>
    %12 = vector.shape_cast %11 : vector<8x1xf32> to vector<1x8x1xf32>
    %13 = vector.broadcast %6 : vector<1x8x1xf32> to vector<1x8x128xf32>
    %14 = arith.mulf %3, %13 : vector<1x8x128xf32>
    %15 = vector.broadcast %8 : vector<1x8x1xf32> to vector<1x8x128xf32>
    %16 = arith.addf %14, %15 : vector<1x8x128xf32>
    %cst = arith.constant 0.000000e+00 : f32
    %17 = vector.broadcast %cst : f32 to vector<1x8x128xf32>
    %18 = arith.cmpf olt, %16, %17 : vector<1x8x128xf32>
    %cst_5 = arith.constant 5.000000e-01 : f32
    %19 = vector.broadcast %cst_5 : f32 to vector<1x8x1xf32>
    %20 = arith.mulf %10, %19 : vector<1x8x1xf32>
    %21 = vector.shape_cast %20 : vector<1x8x1xf32> to vector<1x8x1xf32>
    %22 = vector.broadcast %21 : vector<1x8x1xf32> to vector<1x8x128xf32>
    %23 = vector.shape_cast %10 : vector<1x8x1xf32> to vector<1x8x1xf32>
    %24 = vector.broadcast %23 : vector<1x8x1xf32> to vector<1x8x128xf32>
    %25 = arith.select %18, %22, %24 : vector<1x8x128xi1>, vector<1x8x128xf32>
    %26 = arith.mulf %16, %25 : vector<1x8x128xf32>
    %27 = vector.broadcast %12 : vector<1x8x1xf32> to vector<1x8x128xf32>
    %28 = arith.addf %26, %27 : vector<1x8x128xf32>
    %c0_6 = arith.constant 0 : index
    %c0_7 = arith.constant 0 : index
    %c0_8 = arith.constant 0 : index
    %29 = vector.load %arg4[%c0_6, %c0_7, %c0_8] : memref<1x8x128xf32, #tpu.memory_space<vmem>>, vector<1x8x128xf32>
    tpu.vector_store %arg4[%c0_6, %c0_7, %c0_8], %28 {strides = array<i32>} : memref<1x8x128xf32, #tpu.memory_space<vmem>>, vector<1x8x128xf32>,
    %30 = arith.extui %18 : vector<1x8x128xi1> to vector<1x8x128xi32>
    %31 = arith.sitofp %30 : vector<1x8x128xi32> to vector<1x8x128xf32>
    %cst_9 = arith.constant dense<0.000000e+00> : vector<1x8xf32>
    %32 = vector.multi_reduction <add>, %31, %cst_9 [2] : vector<1x8x128xf32> to vector<1x8xf32>
    %33 = vector.shape_cast %32 : vector<1x8xf32> to vector<1x8x1xf32>
    %cst_10 = arith.constant dense<0.000000e+00> : vector<1x1xf32>
    %34 = vector.multi_reduction <add>, %33, %cst_10 [1] : vector<1x8x1xf32> to vector<1x1xf32>
    %35 = vector.shape_cast %34 : vector<1x1xf32> to vector<1x1x1xf32>
    %c0_11 = arith.constant 0 : index
    %c0_12 = arith.constant 0 : index
    %c0_13 = arith.constant 0 : index
    %36 = vector.load %arg5[%c0_11, %c0_12, %c0_13] : memref<1x1x1xi32, #tpu.memory_space<vmem>>, vector<1x1x1xi32>
    %37 = arith.fptosi %35 : vector<1x1x1xf32> to vector<1x1x1xi32>
    %38 = arith.addi %36, %37 : vector<1x1x1xi32>
    %c0_14 = arith.constant 0 : index
    %c0_15 = arith.constant 0 : index
    %c0_16 = arith.constant 0 : index
    %39 = vector.load %arg5[%c0_14, %c0_15, %c0_16] : memref<1x1x1xi32, #tpu.memory_space<vmem>>, vector<1x1x1xi32>
    tpu.vector_store %arg5[%c0_14, %c0_15, %c0_16], %38 {strides = array<i32>} : memref<1x1x1xi32, #tpu.memory_space<vmem>>, vector<1x1x1xi32>,
    return
  }
  func.func @transform_0(%arg0: i32, %arg1: i32) -> (i32, i32, i32) {
    %c0_i32 = arith.constant 0 : i32
    %c0_i32_0 = arith.constant 0 : i32
    return %arg0, %arg1, %c0_i32 : i32, i32, i32
  }
  func.func @transform_1(%arg0: i32, %arg1: i32) -> (i32, i32) {
    %c0_i32 = arith.constant 0 : i32
    %c0_i32_0 = arith.constant 0 : i32
    return %arg1, %c0_i32 : i32, i32
  }
  func.func @transform_2(%arg0: i32, %arg1: i32) -> (i32, i32, i32) {
    %c0_i32 = arith.constant 0 : i32
    %c0_i32_0 = arith.constant 0 : i32
    return %arg0, %arg1, %c0_i32 : i32, i32, i32
  }
  func.func @transform_3(%arg0: i32, %arg1: i32) -> (i32, i32, i32) {
    %c0_i32 = arith.constant 0 : i32
    %c0_i32_0 = arith.constant 0 : i32
    %c0_i32_1 = arith.constant 0 : i32
    return %arg0, %c0_i32, %c0_i32_0 : i32, i32, i32
  }
}

</mosaic_0001>

<bundles_post_ra>
// kernel: tpu_custom_call.1
= control target key start
LH: loop header
LB: loop body
LE: loop exit
PB: predicated region body
PF: predicated region fallthrough
CT: control target
= control target key end

     0   :  { %9 = vsyncpa [#allocation3], 0  ;;  %s838_s0 = inlined_call_operand.hbm [shape: f32[2,8,128], index: 0, kind: input, shape index: {}]   ;;  %s839_s1 = inlined_call_operand.vmem [shape: f32[8,4], index: 1, kind: input, shape index: {}]   ;;  %s840_s2 = inlined_call_operand.hbm [shape: f32[2,8,128], index: 2, kind: output, shape index: {0}]   ;;  %s841_s3 = inlined_call_operand.vmem [shape: s32[2,1,1], index: 3, kind: output, shape index: {1}]  }
   0x1   :  { %11 = vsyncpa [#allocation3 + $0x1], 0 }
   0x2   :  { %12 = vsyncpa [#allocation4], 0 }
   0x3   :  { %14 = vsyncpa [#allocation4 + $0x1], 0  ;;  %s647_s12 = smov 0   ;;  %s649_s13 = smov 0  }
   0x4   :  { %s651_s14 = smov 0   ;;  %s653_s15 = smov 0  }
   0x5   :  { %s655_s16 = smov 0   ;;  %s657_s17 = smov 0  }
   0x6 LB: > { %s417_s18 = sadd.s32 4294967295, %s618_s17   ;;  %s418_s19 = sadd.s32 4294967294, %s618_s17   ;;  %s618_s17 = sphi %s657_s17, %s20_s17   ;;  %s614_s16 = sphi %s655_s16, %s857_s16   ;;  %s610_s15 = sphi %s653_s15, %s856_s15   ;;  %s606_s14 = sphi %s651_s14, %s855_s14   ;;  %s602_s13 = sphi %s649_s13, %s854_s13   ;;  %s598_s12 = sphi %s647_s12, %s853_s12  }
   0x7   : > { %s32_s20 = sadd.s32 1, %s614_s16  ;;  %s41_s21 = sadd.s32 1, %s606_s14 }
   0x8   : > { %p34_p0 = scmp.ge.s32.totalorder %s32_s20, 2  ;;  %p48_p1 = scmp.ne.s32.totalorder %s606_s14, %s602_s13 }
   0x9   : > { %p49_p2 = scmp.eq.s32.totalorder %s618_s17, 0  ;;  %p54_p3 = scmp.ne.s32.totalorder %s602_s13, %s598_s12 }
   0xa   : > { %s859_s20 = smov (%p34_p0, %s32_s20), 0  ;;  %p55_p5 = scmp.eq.s32.totalorder %s417_s18, 0 }
   0xb   : > { %p688_p4 = por %p49_p2, %p48_p1  ;;  %s36_s23 = ssub.s32 %s614_s16, %s859_s20 }
   0xc   : > { %p106_p6 = scmp.eq.s32.totalorder %s417_s18, 1  ;;  %p39_p7 = scmp.eq.s32.totalorder %s36_s23, 0 }
   0xd   : > { %p694_p8 = por %p55_p5, %p54_p3  ;;  %p112_p10 = scmp.eq.s32.totalorder %s418_s19, 1 }
   0xe   : > { %p698_p9 = por %p106_p6, %p48_p1  ;;  %p446_p13 = scmp.lt.s32.totalorder %s618_s17, 2 }
   0xf   : > { %s703_s26 = scalar_select %p39_p7, %s606_s14, %s41_s21  }
  0x10   : > { %s845_s25 = scalar_select %p698_p9, 1, 0 }
  0x11   : > { %p705_p11 = por %p112_p10, %p54_p3  ;;  %s165_s28 = sand.u32 1, %s606_s14  }
  0x12   : > { %s422_s29 = sshll.u32 %s165_s28, 3  ;;  %s423_s30 = sshll.u32 %s614_s16, 7 }
  0x13   : > { %s846_s27 = scalar_select %p705_p11, 1, 0 }
  0x14   : > { %s716_s6 = scalar_lea.hbm %s838_s0, %s423_s30  ;;  %s169_s7 = scalar_lea.vmem [#allocation2], %s422_s29 }
  0x15   : > { %s177_s8 = sshll.u32 %s169_s7, 4  ;;  %p722_p0 = pnand %p446_p13, %p688_p4  ;;  %s718_s8 = int_to_ptr.vmem [resolvable:$true] %s177_s8 }
  0x16   : > { %s166_s10 = scalar_lea.sflag [#allocation3], %s165_s28  ;;  %s506_s11 = scalar_lea.hbm %s716_s6, 128 }
  0x17   : > { %p507_p3 = scmp.ne.s32.totalorder %s716_s6, %s506_s11  ;;  %p508_p5 = pneg %p722_p0 }
  0x18   : > { %s511_s21 = scalar_lea.hbm %s838_s0, 256  ;;  %p512_p4 = scmp.lt.u32.totalorder %s716_s6, %s838_s0 }
  0x19   : > { %p509_p6 = pnand %p508_p5, %p507_p3  ;;  %p513_p10 = scmp.lt.u32.totalorder %s511_s21, %s506_s11 }
  0x1a   : > { %p515_p12 = scmp.lt.u32.totalorder %s506_s11, %s716_s6 }
  0x1b   : > { %p510_p7 = pneg %p509_p6  ;;  %p514_p13 = por %p513_p10, %p512_p4 }
  0x1d   : > { %p516_p1 = por %p515_p12, %p514_p13 }
  0x1f   : > { %p517_p2 = pnand %p516_p1, %p510_p7 }
  0x21   : > { %520 = shalt.err (!%p517_p2)
}
  0x22   : > { %s521_s28 = scalar_lea.vmem %s718_s8, 128  ;;  %s620_s29 = smov [#allocation2]  }
  0x23   : > { %p522_p3 = scmp.ne.s32.totalorder %s718_s8, %s521_s28  ;;  %s526_s30 = sshll.u32 %s620_s29, 4  ;;  %s527_s30 = int_to_ptr.vmem [resolvable:$false] %s526_s30 }
  0x24   : > { %s528_s4 = scalar_lea.vmem %s527_s30, 256  ;;  %p529_p9 = scmp.lt.s32.totalorder %s718_s8, %s527_s30 }
  0x25   : > { %p524_p6 = pnand %p522_p3, %p508_p5  ;;  %p530_p4 = scmp.lt.s32.totalorder %s528_s4, %s521_s28 }
  0x27   : > { %p525_p11 = pneg %p524_p6  ;;  %p531_p10 = por %p530_p4, %p529_p9 }
  0x29   : > { %p532_p12 = pnand %p531_p10, %p525_p11 }
  0x2b   : > { %535 = shalt.err (!%p532_p12)
}
  0x2c   : > { %441 = dma.hbm_to_vmem [thread:$0]  (!%p722_p0), %s716_s6, 128, %s718_s8, %s166_s10  }
  0x2d   : > { %p848_p1 = scmp.lt.s32.totalorder %s618_s17, 3  ;;  %p849_p2 = scmp.ge.s32.totalorder %s618_s17, 1 }
  0x2f   : > { %p183_p5 = pnand %p849_p2, %p848_p1 }
  0x30   : > { %s758_s5 = sand.u32 (!%p183_p5), 1, %s602_s13  }
  0x31   : > { %186 = sbr.rel (%p183_p5) target bundleno = 368 (0x170), region = 28  ;;  %s425_s7 = sshll.u32 (!%p183_p5), %s758_s5, 3 }
  0x32   : > { %s189_s11 = scalar_lea.sflag (!%p183_p5), [#allocation3], %s758_s5  ;;  %s192_s9 = scalar_lea.vmem (!%p183_p5), [#allocation2], %s425_s7 }
  0x38   : > { %589 = dma.done.wait (%p694_p8), %s189_s11, 128  }
  0x39   : > { %591 = vsyncadd (%p694_p8), %s189_s11, 4294967168  ;;  %p226_p9 = scmp.lt.s32.totalorder %s610_s15, 1  ;;  %v621_v0 = vmov 0   ;;  %vm233_vm0 = vcmask 0   ;;  %v236_v1 = vld [vmem:[%s839_s1] sm:$0xff]  ;;  %v622_v2 = vmov 1  }
  0x3a   : > { %501 = vset.pattern.permute.xlu0 %v621_v0  ;;  %v623_v3 = vmov 2   ;;  %v624_v4 = vmov 3   ;;  %v235_v6 = vld [vmem:[%s192_s9] sm:$0xff]  ;;  %v625_v10 = vmov 0.0   ;;  %v249_v12 = vmul.f32 0.5, %v236_v1  ;;  %s429_s24 = sshll.u32 %s610_s15, 7 }
  0x3b   : > { %s227_s6 = scalar_select %p226_p9, %s610_s15, 1  ;;  %239 = vperm.xlu0 %501, %v236_v1   ;;  %503 = vset.pattern.permute.xlu1 %v623_v3 }
  0x3c   : > { %s216_s22 = scalar_lea.vmem [#allocation5], %s425_s7  ;;  %s786_s30 = scalar_lea.hbm %s840_s2, %s429_s24 }
  0x3d   : > { %s773_s18 = scalar_lea.vmem %s841_s3, %s227_s6  ;;  %s300_s23 = sshll.u32 %s216_s22, 4  ;;  %s788_s23 = int_to_ptr.vmem [resolvable:$true] %s300_s23 }
  0x3e   : > { %234 = vst.msk [vmem:[%s773_s18] sm:$0x1] %vm233_vm0, %v621_v0  ;;  %s283_s15 = scalar_lea.sflag [#allocation4], %s758_s5  ;;  %s536_s4 = scalar_lea.vmem %s788_s23, 128 }
  0x3f   : > { %502 = vset.pattern.permute.xlu0 %v622_v2  ;;  %p537_p8 = scmp.ne.s32.totalorder %s788_s23, %s536_s4  ;;  %p850_p11 = scmp.ne.s32.totalorder %s845_s25, 0 }
  0x40   : > { %244 = vperm.xlu0 %502, %v236_v1   ;;  %s626_s7 = smov [#allocation5]  }
  0x41   : > { %p538_p0 = pnand %p537_p8, %p850_p11  ;;  %s540_s11 = sshll.u32 %s626_s7, 4  ;;  %s541_s11 = int_to_ptr.vmem [resolvable:$false] %s540_s11 }
  0x42   : > { %s542_s9 = scalar_lea.vmem %s541_s11, 256  ;;  %p543_p13 = scmp.lt.s32.totalorder %s788_s23, %s541_s11 }
  0x43   : > { %p539_p7 = pneg %p538_p0  ;;  %p544_p3 = scmp.lt.s32.totalorder %s542_s9, %s536_s4 }
  0x44   : > { %504 = vset.pattern.permute.xlu0 %v623_v3 }
  0x45   : > { %256 = vperm.xlu0 %504, %v236_v1   ;;  %p545_p6 = por %p544_p3, %p543_p13 }
  0x47   : > { %p546_p4 = pnand %p545_p6, %p539_p7 }
  0x49   : > { %505 = vset.pattern.permute.xlu0 %v624_v4 }
  0x4a   : > { %262 = vperm.xlu0 %505, %v236_v1  }
  0xba   : > { %v240_v5 = vpop.permute.xlu0 %239 }
  0xbb   : > { %v242_v7 = vmul.f32 %v240_v5, %v235_v6 }
  0xbf   : > { %v245_v8 = vpop.permute.xlu0 %244 }
  0xc0   : > { %v247_v9 = vadd.f32 %v245_v8, %v242_v7 }
  0xc2   : > { %vm248_vm1 = vcmp.lt.f32.partialorder %v247_v9, 0.0 }
  0xc3   : > { %v427_v11 = vsel %vm248_vm1, 1.0, %v625_v10 }
  0xc4   : > { %269 = vadd.xlane.f32.xlu1 %v427_v11  ;;  %v257_v13 = vpop.permute.xlu0 %256 }
  0xc9   : > { %v263_v20 = vpop.permute.xlu0 %262 }
  0xd5   : > { %252 = vperm.xlu1 %503, %v249_v12  }
 0x151   : > { %v270_v14 = vpop.xlane.xlu1 %269 }
 0x152   : > { %v271_v15 = vrot.slane %v270_v14, 4 }
 0x154   : > { %v272_v16 = vadd.f32 %v271_v15, %v270_v14 }
 0x155   : > { %v253_v17 = vpop.permute.xlu1 %252 }
 0x156   : > { %v273_v18 = vrot.slane %v272_v16, 2  ;;  %v259_v19 = vsel %vm248_vm1, %v253_v17, %v257_v13 }
 0x157   : > { %v260_v21 = vmul.f32 %v259_v19, %v247_v9 }
 0x158   : > { %v274_v22 = vadd.f32 %v273_v18, %v272_v16 }
 0x159   : > { %v265_v23 = vadd.f32 %v263_v20, %v260_v21 }
 0x15a   : > { %v275_v24 = vrot.slane %v274_v22, 1 }
 0x15b   : > { %266 = vst [vmem:[%s216_s22] sm:$0xff] %v265_v23 }
 0x15c   : > { %v276_v25 = vadd.f32 %v275_v24, %v274_v22 }
 0x15d   : > { %549 = shalt.err (!%p546_p4)
}
 0x15e   : > { %s550_s5 = scalar_lea.hbm %s786_s30, 128  ;;  %s554_s10 = scalar_lea.hbm %s840_s2, 256 }
 0x15f   : > { %p551_p10 = scmp.ne.s32.totalorder %s786_s30, %s550_s5  ;;  %p555_p2 = scmp.lt.u32.totalorder %s786_s30, %s840_s2 }
 0x160   : > { %p556_p5 = scmp.lt.u32.totalorder %s554_s10, %s550_s5  ;;  %p558_p8 = scmp.lt.u32.totalorder %s550_s5, %s786_s30 }
 0x161   : > { %p552_p12 = pnand %p551_p10, %p850_p11 }
 0x162   : > { %p557_p9 = por %p556_p5, %p555_p2 }
 0x163   : > { %p553_p1 = pneg %p552_p12 }
 0x164   : > { %p559_p0 = por %p558_p8, %p557_p9 }
 0x166   : > { %p560_p7 = pnand %p559_p0, %p553_p1 }
 0x168   : > { %563 = shalt.err (!%p560_p7)
}
 0x169   : > { %436 = dma.vmem_to_hbm [thread:$0]  (%p850_p11), %s788_s23, 128, %s786_s30, %s283_s15   ;;  %v432_v26 = vtrunc.f32 %v276_v25  ;;  %v277_v27 = vld [vmem:[%s773_s18] sm:$0x1] }
 0x16b   : > { %v433_v28 = vcvt.f32.s32 %v432_v26 }
 0x16d   : > { %v279_v29 = vadd.s32 %v433_v28, %v277_v27 }
 0x16f   : > { %281 = vst.msk [vmem:[%s773_s18] sm:$0x1] %vm233_vm0, %v279_v29 }
 0x170 PF: > { %s315_s24 = sand.u32 1, %s598_s12   ;;  %p851_p13 = scmp.ne.s32.totalorder %s846_s27, 0 }
 0x171   : > { %p852_p3 = scmp.ge.s32.totalorder %s618_s17, 2  ;;  %s316_s25 = scalar_lea.sflag [#allocation4], %s315_s24 }
 0x173   : > { %p443_p6 = pnand %p852_p3, %p851_p13 }
 0x175   : > { %593 = dma.done.wait (!%p443_p6), %s316_s25, 128  }
 0x176   : > { %595 = vsyncadd (!%p443_p6), %s316_s25, 4294967168  ;;  %s20_s17 = sadd.s32 1, %s618_s17   ;;  %s853_s12 = smov %s602_s13 }
 0x177   : > { %p17_p11 = scmp.ge.s32.totalorder %s20_s17, 4   ;;  %s854_s13 = smov %s606_s14 }
 0x178   : > { %s855_s14 = smov %s703_s26  ;;  %s856_s15 = smov %s614_s16 }
 0x179   : > { %s857_s16 = smov %s859_s20  ;;  %19 = sbr.rel (!%p17_p11) target bundleno = 6 (0x6), region = 92 }
 0x180   :  { %327 = vsyncpa [#allocation3], 1 }
 0x181   :  { %329 = vsyncpa [#allocation3 + $0x1], 1 }
 0x182   :  { %330 = vsyncpa [#allocation4], 1 }
 0x183   :  { %332 = vsyncpa [#allocation4 + $0x1], 1 }

</bundles_post_ra>
